<compile_context>
chip_gen: v6e
topology: v6e:2x2x1
jax: 0.10.0
libtpu: 0.0.40
codegen_flags: <defaults>
</compile_context>

<pallas_src>
import functools

import jax
import jax.numpy as jnp
import numpy as np
from jax.experimental import pallas as pl
from jax.experimental.pallas import tpu as pltpu

BN_EPS = 1e-5
NEG_SLOPE = 0.2


def _round_up(x, m):
    return (x + m - 1) // m * m


def _vmem_capacity_bytes():
    try:
        info = pltpu.get_tpu_info()
        cap = getattr(info, "vmem_capacity_bytes", None)
        if cap:
            return int(cap)
    except Exception:
        pass
    return 64 << 20                          # v7x floor


def _compiler_params(vmem_bytes):
    cap = _vmem_capacity_bytes()
    limit = max(int(vmem_bytes) + (4 << 20), 24 << 20)
    limit = min(limit, cap - (2 << 20))      # clamp to chip capacity (64 MiB on v7x)
    return pltpu.CompilerParams(
        dimension_semantics=("parallel",),
        vmem_limit_bytes=int(limit),
    )


def _resident_spec(block_shape, index_map):
    """Grid-invariant (constant index_map) input: single-buffer it when supported."""
    if hasattr(pl, "Buffered"):
        try:
            return pl.BlockSpec(block_shape, index_map, pipeline_mode=pl.Buffered(1))
        except Exception:
            pass
    return pl.BlockSpec(block_shape, index_map)


# ---------------------------------------------------------------------------
# Kernel A: fused projection + attention-score halves (single MXU matmul).
#   y = [x | emb] @ [[W_ext], [E_att]]  ->  packed [tile, Dp] bf16
# ---------------------------------------------------------------------------
def _project_kernel(xe_ref, w_ref, y_ref):
    y_ref[...] = jnp.dot(xe_ref[...], w_ref[...],
                         preferred_element_type=jnp.float32).astype(y_ref.dtype)


# ---------------------------------------------------------------------------
# Kernel B: per-destination-tile edge work.
#   leaky_relu + per-destination softmax (pairwise VPU ops, EUP reciprocal) on the
#   precomputed [tile, K] raw-score table, scatter of the normalized weights into a
#   single [tile, NT] weighted adjacency, ONE MXU matmul against the VMEM-resident
#   packed Y, + bias.  Also emits per-tile sum / sum-of-squares for BatchNorm.
# ---------------------------------------------------------------------------
def _attn_aggregate_kernel(y_all_ref, alpha_ref, nbr_ref, bias_ref,
                           agg_ref, pstat_ref, *, neg_slope):
    t, dp = agg_ref.shape
    nt = y_all_ref.shape[0]
    k_nbrs = nbr_ref.shape[1]

    nbr = nbr_ref[...]                                         # [T, K] int32

    # leaky_relu on each lane-dense [T, 1] score column (pure VPU, no cross-lane ops)
    cols = []
    for k in range(k_nbrs):                                    # static, K small
        a = alpha_ref[:, k:k + 1]
        cols.append(jnp.where(a >= 0, a, neg_slope * a))

    m = cols[0]
    for k in range(1, k_nbrs):                                 # pairwise max tree
        m = jnp.maximum(m, cols[k])
    es = [jnp.exp(c - m) for c in cols]
    denom = es[0]
    for k in range(1, k_nbrs):
        denom = denom + es[k]
    inv = pl.reciprocal(denom, approx=True)                    # EUP slot, ~free

    # Single [T, NT] weighted adjacency (built in f32, cast once), then ONE matmul.
    lane = jax.lax.broadcasted_iota(jnp.int32, (t, nt), 1)     # hoisted out of k-loop
    a_w = jnp.zeros((t, nt), jnp.float32)
    for k in range(k_nbrs):
        a_w = a_w + jnp.where(lane == nbr[:, k:k + 1], es[k] * inv, 0.0)

    acc = jnp.dot(a_w.astype(jnp.bfloat16), y_all_ref[...],
                  preferred_element_type=jnp.float32)          # [T, Dp] aggregation
    out = acc + bias_ref[...]
    agg_ref[...] = out.astype(agg_ref.dtype)                   # bf16 B->C intermediate

    psum = jnp.sum(out, axis=0, keepdims=True)                 # f32 stats for BN
    psq = jnp.sum(out * out, axis=0, keepdims=True)
    pstat_ref[...] = jnp.concatenate([psum, psq], axis=0)[None]    # [1, 2, Dp]


# ---------------------------------------------------------------------------
# Kernel C: streaming BatchNorm (precomputed scale/shift) + ReLU.
# ---------------------------------------------------------------------------
def _bn_relu_kernel(agg_ref, scale_ref, shift_ref, o_ref):
    out = agg_ref[...].astype(jnp.float32) * scale_ref[...] + shift_ref[...]
    o_ref[...] = jnp.maximum(out, 0.0)                         # ReLU


# ---------------------------------------------------------------------------
# Wrapper
# ---------------------------------------------------------------------------
def _pick_tile(nt):
    # Cap at 128: fills the v5e MXU rows already; bf16 blocks need 16-row tiles.
    for cand in (128, 64, 32, 16):
        if nt % cand == 0:
            return cand
    return nt


def _build_neighbor_table(edge_index, num_nodes, topk):
    """remove_self_loops + add_self_loops -> dense [NT, topk+1] neighbor table."""
    # TODO(synk): edge-list -> neighbor-table preprocessing stays host-side NumPy
    # (data-dependent sizes); everything downstream runs in Pallas / XLA.
    ei = np.asarray(edge_index)
    src, dst = ei[0], ei[1]
    keep = src != dst
    src, dst = src[keep], dst[keep]
    counts = np.bincount(dst, minlength=num_nodes)
    assert np.all(counts == topk), (
        "every destination node must have exactly `topk` non-self incoming edges")
    order = np.argsort(dst, kind="stable")
    nbr = src[order].reshape(num_nodes, topk)
    self_loop = np.arange(num_nodes, dtype=nbr.dtype)[:, None]
    return np.concatenate([nbr, self_loop], axis=1).astype(np.int32)     # [NT, K]


def gnn_layer_forward(params, x, edge_index, embedding, topk, *, tile=None):
    """x: [NT, Cin] f32, edge_index: [2, E] int32 (row0=src, row1=dst),
    embedding: [NT, D] f32.  Returns ReLU(BatchNorm(GraphLayer(x))) : [NT, D] f32."""
    NT, Cin = x.shape
    D = params["w"].shape[1]
    K = topk + 1
    Dp = _round_up(D + 2, 128)            # packed lane-dense width: [ xw | s_i | s_j | pad ]

    if tile is None:
        tile = _pick_tile(NT)
    assert NT % tile == 0 and tile % 16 == 0, (NT, tile)    # bf16 blocks: 16-row minimum
    G = NT // tile

    nbr = jnp.asarray(_build_neighbor_table(edge_index, NT, topk))       # [NT, K] int32

    # --- fold attention dot-products into the projection matmul -----------------
    f32 = jnp.float32
    w = params["w"].astype(f32)                                          # [Cin, D]
    att_i = params["att_i"].reshape(D).astype(f32)
    att_j = params["att_j"].reshape(D).astype(f32)
    att_em_i = params["att_em_i"].reshape(D).astype(f32)
    att_em_j = params["att_em_j"].reshape(D).astype(f32)

    # one stacked weight: rows [:Cin] act on x, rows [Cin:] act on emb
    w_all = jnp.zeros((Cin + D, Dp), f32)
    w_all = w_all.at[:Cin, :D].set(w)
    w_all = w_all.at[:Cin, D].set(w @ att_i)
    w_all = w_all.at[:Cin, D + 1].set(w @ att_j)
    w_all = w_all.at[Cin:, D].set(att_em_i)
    w_all = w_all.at[Cin:, D + 1].set(att_em_j)

    bias_p = jnp.zeros((1, Dp), f32).at[:, :D].set(params["bias"].reshape(1, D))
    gamma_p = jnp.zeros((1, Dp), f32).at[:, :D].set(params["gamma"].reshape(1, D))
    beta_p = jnp.zeros((1, Dp), f32).at[:, :D].set(params["beta"].reshape(1, D))

    # bf16 MXU inputs, f32 accumulation; softmax / BN math stays f32.
    bf16 = jnp.bfloat16
    xe = jnp.concatenate([x, embedding], axis=1).astype(bf16)            # [NT, Cin+D]
    w_all_b = w_all.astype(bf16)

    # --- kernel A: single fused projection + packed attention scores ------------
    vmem_a = 2 * tile * (Cin + D) * 2 + (Cin + D) * Dp * 2 + 2 * tile * Dp * 2
    y = pl.pallas_call(
        _project_kernel,
        grid=(G,),
        in_specs=[
            pl.BlockSpec((tile, Cin + D), lambda i: (i, 0)),
            _resident_spec((Cin + D, Dp), lambda i: (0, 0)),   # constant weight, 1-buffered
        ],
        out_specs=pl.BlockSpec((tile, Dp), lambda i: (i, 0)),
        out_shape=jax.ShapeDtypeStruct((NT, Dp), bf16),
        compiler_params=_compiler_params(vmem_a),
    )(xe, w_all_b)

    # --- per-edge raw score table (tiny [NT, K] gather + add, plain XLA) --------
    s_i = y[:, D].astype(f32)
    s_j = y[:, D + 1].astype(f32)
    alpha_tab = s_i[:, None] + jnp.take(s_j, nbr, axis=0)                # [NT, K] f32

    # --- kernel B: softmax weights -> ONE weighted-adjacency matmul + bias ------
    # TODO(synk): for graphs where NT*Dp*2 + tile*NT*10 approaches VMEM capacity
    # (64 MiB on v7x), switch kernel B to PrefetchScalarGridSpec scalar-prefetch of
    # the neighbor table + manual make_async_copy gather from Y kept in HBM.
    vmem_b = (NT * Dp * 2                      # resident packed Y (single buffer)
              + 2 * tile * K * (4 + 4)         # score table + neighbor table (2-buffered)
              + 2 * Dp * 4                     # bias
              + 2 * tile * Dp * 2              # bf16 aggregation output
              + 2 * 2 * Dp * 4                 # per-tile stats output
              + tile * NT * (4 + 4 + 2)        # iota + f32 adjacency + bf16 cast
              + 2 * tile * Dp * 4)             # matmul acc + biased out (f32)
    agg, pstats = pl.pallas_call(
        functools.partial(_attn_aggregate_kernel, neg_slope=NEG_SLOPE),
        grid=(G,),
        in_specs=[
            _resident_spec((NT, Dp), lambda i: (0, 0)),        # packed Y, VMEM-resident
            pl.BlockSpec((tile, K), lambda i: (i, 0)),         # raw score table tile
            pl.BlockSpec((tile, K), lambda i: (i, 0)),         # neighbor table tile
            pl.BlockSpec((1, Dp), lambda i: (0, 0)),           # bias (padded)
        ],
        out_specs=(
            pl.BlockSpec((tile, Dp), lambda i: (i, 0)),
            pl.BlockSpec((1, 2, Dp), lambda i: (i, 0, 0)),
        ),
        out_shape=(
            jax.ShapeDtypeStruct((NT, Dp), bf16),              # bf16 B->C intermediate
            jax.ShapeDtypeStruct((G, 2, Dp), jnp.float32),     # per-tile sum / sum-of-sq
        ),
        compiler_params=_compiler_params(vmem_b),
    )(y, alpha_tab, nbr, bias_p)

    # --- BN statistics reduced once (tiny) and folded into scale/shift ----------
    totals = jnp.sum(pstats, axis=0)                           # [2, Dp]
    mean = totals[0:1, :] / NT
    var = totals[1:2, :] / NT - mean * mean                    # biased batch variance
    scale = jax.lax.rsqrt(var + BN_EPS) * gamma_p              # [1, Dp]
    shift = beta_p - mean * scale                              # [1, Dp]

    # --- kernel C: streaming normalize + ReLU -----------------------------------
    vmem_c = 2 * tile * Dp * 2 + 2 * 2 * Dp * 4 + 2 * tile * Dp * 4
    out = pl.pallas_call(
        _bn_relu_kernel,
        grid=(G,),
        in_specs=[
            pl.BlockSpec((tile, Dp), lambda i: (i, 0)),
            pl.BlockSpec((1, Dp), lambda i: (0, 0)),
            pl.BlockSpec((1, Dp), lambda i: (0, 0)),
        ],
        out_specs=pl.BlockSpec((tile, Dp), lambda i: (i, 0)),
        out_shape=jax.ShapeDtypeStruct((NT, Dp), jnp.float32),
        compiler_params=_compiler_params(vmem_c),
    )(agg, scale, shift)

    return out[:, :D]                        # drop lane padding


# ---------------------------------------------------------------------------
# Pure-JAX reference (mirrors the PyTorch message-passing semantics, f32)
# ---------------------------------------------------------------------------
def gnn_layer_ref(params, x, edge_index, embedding):
    NT = x.shape[0]
    xw = x @ params["w"]
    src, dst = np.asarray(edge_index[0]), np.asarray(edge_index[1])
    keep = src != dst
    src, dst = src[keep], dst[keep]
    src = jnp.asarray(np.concatenate([src, np.arange(NT)]))
    dst = jnp.asarray(np.concatenate([dst, np.arange(NT)]))

    key_i = jnp.concatenate([xw[dst], embedding[dst]], axis=1)
    key_j = jnp.concatenate([xw[src], embedding[src]], axis=1)
    cat_i = jnp.concatenate([params["att_i"], params["att_em_i"]], axis=1)[0]
    cat_j = jnp.concatenate([params["att_j"], params["att_em_j"]], axis=1)[0]
    alpha = key_i @ cat_i + key_j @ cat_j
    alpha = jnp.where(alpha >= 0, alpha, NEG_SLOPE * alpha)
    amax = jax.ops.segment_max(alpha, dst, num_segments=NT)
    e = jnp.exp(alpha - amax[dst])
    denom = jax.ops.segment_sum(e, dst, num_segments=NT)
    a = e / denom[dst]
    out = jax.ops.segment_sum(a[:, None] * xw[src], dst, num_segments=NT)
    out = out + params["bias"]
    mean = jnp.mean(out, axis=0, keepdims=True)
    var = jnp.mean((out - mean) ** 2, axis=0, keepdims=True)
    out = (out - mean) * jax.lax.rsqrt(var + BN_EPS)
    out = out * params["gamma"] + params["beta"]
    return jnp.maximum(out, 0.0)


if __name__ == "__main__":
    # Deterministic problem: N=16 nodes, batch=2 -> NT=32, topk=3 neighbors,
    # tile=16 -> a 2-step node grid (exercises tiling + the BN partial-stats path).
    N, B, topk = 16, 2, 3
    NT = N * B
    in_channel, out_channel = 16, 32

    key = jax.random.PRNGKey(0)
    k_x, k_e, k_w, k_ai, k_aj, k_ei, k_ej = jax.random.split(key, 7)

    x = jax.random.normal(k_x, (NT, in_channel), jnp.float32)
    embedding = jax.random.normal(k_e, (NT, out_channel), jnp.float32)

    # Deterministic top-k edge index (no self loops; self loops are added inside).
    base = np.arange(NT)
    nbr_topk = (base[:, None] + np.array([1, 2, 5])[None, :]) % NT       # [NT, topk]
    edge_index = jnp.asarray(
        np.stack([nbr_topk.reshape(-1), np.repeat(base, topk)]), dtype=jnp.int32)

    def glorot(k, shape):
        a = float(np.sqrt(6.0 / (shape[-2] + shape[-1])))
        return jax.random.uniform(k, shape, jnp.float32, -a, a)

    params = {
        "w": glorot(k_w, (in_channel, out_channel)),          # Linear weight (x @ W form)
        "att_i": glorot(k_ai, (1, out_channel)),
        "att_j": glorot(k_aj, (1, out_channel)),
        # reset_parameters() zero-inits att_em_* / bias; small nonzero values are used
        # so the embedding-attention path is actually exercised.
        "att_em_i": 0.1 * glorot(k_ei, (1, out_channel)),
        "att_em_j": 0.1 * glorot(k_ej, (1, out_channel)),
        "bias": jnp.zeros((1, out_channel), jnp.float32),
        "gamma": jnp.ones((1, out_channel), jnp.float32),     # BatchNorm1d weight
        "beta": jnp.zeros((1, out_channel), jnp.float32),     # BatchNorm1d bias
    }

    out = gnn_layer_forward(params, x, edge_index, embedding, topk, tile=16)
    out = jax.block_until_ready(out)

    ref = jax.block_until_ready(gnn_layer_ref(params, x, edge_index, embedding))
    assert out.shape == (NT, out_channel) and out.dtype == jnp.float32
    max_err = float(np.max(np.abs(np.asarray(out) - np.asarray(ref))))
    assert np.allclose(np.asarray(out), np.asarray(ref), rtol=5e-2, atol=8e-2), (
        f"Pallas output does not match JAX reference (max abs err {max_err:.4f})")

    print("KERNEL_OK")
</pallas_src>

<mosaic_0001>
module attributes {stable_mosaic.version = 11 : i64} {
  func.func @_project_kernel(%arg0: i32, %arg1: memref<16x48xbf16, #tpu.memory_space<vmem>>, %arg2: memref<48x128xbf16, #tpu.memory_space<vmem>>, %arg3: memref<16x128xbf16, #tpu.memory_space<vmem>>) attributes {dimension_semantics = [#tpu.dimension_semantics<parallel>], iteration_bounds = array<i64: 2>, scalar_prefetch = 0 : i64, scratch_operands = 0 : i64, tpu.core_type = #tpu.core_type<tc>, window_params = [{transform_indices = @transform_0, window_bounds = array<i64: 16, 48>}, {pipeline_mode = #tpu.pipeline_mode<synchronous>, transform_indices = @transform_1, window_bounds = array<i64: 48, 128>}, {transform_indices = @transform_2, window_bounds = array<i64: 16, 128>}]} {
    %c0 = arith.constant 0 : index
    %c0_0 = arith.constant 0 : index
    %0 = vector.load %arg1[%c0, %c0_0] : memref<16x48xbf16, #tpu.memory_space<vmem>>, vector<16x48xbf16>
    %c0_1 = arith.constant 0 : index
    %c0_2 = arith.constant 0 : index
    %1 = vector.load %arg2[%c0_1, %c0_2] : memref<48x128xbf16, #tpu.memory_space<vmem>>, vector<48x128xbf16>
    %cst = arith.constant dense<0.000000e+00> : vector<16x128xf32>
    %2 = tpu.matmul %0, %1, %cst {dimension_numbers = #tpu.dot_dimension_numbers<[1], [0], [0], [1], [0, 0, 1, 1], [], []>} : vector<16x48xbf16>, vector<48x128xbf16>, vector<16x128xf32> -> vector<16x128xf32>
    %3 = arith.truncf %2 : vector<16x128xf32> to vector<16x128xbf16>
    %c0_3 = arith.constant 0 : index
    %c0_4 = arith.constant 0 : index
    %4 = vector.load %arg3[%c0_3, %c0_4] : memref<16x128xbf16, #tpu.memory_space<vmem>>, vector<16x128xbf16>
    tpu.vector_store %arg3[%c0_3, %c0_4], %3 {strides = array<i32>} : memref<16x128xbf16, #tpu.memory_space<vmem>>, vector<16x128xbf16>,
    return
  }
  func.func @transform_0(%arg0: i32) -> (i32, i32) {
    %c0_i32 = arith.constant 0 : i32
    %c0_i32_0 = arith.constant 0 : i32
    return %arg0, %c0_i32 : i32, i32
  }
  func.func @transform_1(%arg0: i32) -> (i32, i32) {
    %c0_i32 = arith.constant 0 : i32
    %c0_i32_0 = arith.constant 0 : i32
    %c0_i32_1 = arith.constant 0 : i32
    return %c0_i32, %c0_i32_0 : i32, i32
  }
  func.func @transform_2(%arg0: i32) -> (i32, i32) {
    %c0_i32 = arith.constant 0 : i32
    %c0_i32_0 = arith.constant 0 : i32
    return %arg0, %c0_i32 : i32, i32
  }
}

</mosaic_0001>

<bundles_post_ra>
// kernel: tpu_custom_call.1
= control target key start
LH: loop header
LB: loop body
LE: loop exit
PB: predicated region body
PF: predicated region fallthrough
CT: control target
= control target key end

     0   :  { %7 = vsyncpa [#allocation3], 0  ;;  %s807_s0 = inlined_call_operand.hbm [shape: bf16[32,48], index: 0, kind: input, shape index: {}]   ;;  %s808_s1 = inlined_call_operand.hbm [shape: bf16[48,128], index: 1, kind: input, shape index: {}]   ;;  %s809_s2 = inlined_call_operand.hbm [shape: bf16[32,128], index: 2, kind: output, shape index: {}]  }
   0x1   :  { %9 = vsyncpa [#allocation3 + $0x1], 0 }
   0x2   :  { %10 = vsyncpa [#allocation6], 0 }
   0x3   :  { %11 = vsyncpa [#allocation4], 0 }
   0x4   :  { %13 = vsyncpa [#allocation4 + $0x1], 0  ;;  %s624_s9 = smov 0   ;;  %s626_s10 = smov 0  }
   0x5   :  { %s628_s11 = smov 0   ;;  %s630_s12 = smov 0  }
   0x6 LB: > { %s645_s13 = sadd.s32 4294967295, %s598_s12   ;;  %s363_s14 = sadd.s32 4294967294, %s598_s12   ;;  %s598_s12 = sphi %s630_s12, %s831_s12   ;;  %s594_s11 = sphi %s628_s11, %s830_s11   ;;  %s590_s10 = sphi %s626_s10, %s829_s10   ;;  %s586_s9 = sphi %s624_s9, %s828_s9  }
   0x7   : > { %p39_p0 = scmp.ne.s32.totalorder %s590_s10, %s586_s9  ;;  %p810_p1 = scmp.eq.s32.totalorder %s645_s13, 0 }
   0x8   : > { %p90_p3 = scmp.eq.s32.totalorder %s363_s14, 1  ;;  %p364_p5 = scmp.ge.s32.totalorder %s598_s12, 1 }
   0x9   : > { %p654_p4 = por %p810_p1, %p39_p0  ;;  %p97_p7 = scmp.lt.s32.totalorder %s598_s12, 3 }
   0xa   : > { %p659_p6 = por %p90_p3, %p39_p0  ;;  %s600_s18 = smov [#allocation5]  }
   0xb   : > { %s814_s15 = scalar_select %p654_p4, 1, 0 }
   0xc   : > { %s815_s16 = scalar_select %p659_p6, 1, 0 }
   0xd   : > { %p664_p8 = pnand %p364_p5, %p97_p7  ;;  %s109_s19 = sshll.u32 %s600_s18, 4  ;;  %s110_s19 = int_to_ptr.vmem [resolvable:$true] %s109_s19 }
   0xe   : > { %s678_s21 = sadd.s32 1, %s598_s12   ;;  %s26_s22 = sadd.s32 1, %s594_s11 }
   0xf   : > { %s816_s17 = scalar_select %p664_p8, 1, 0 }
  0x10   : > { %p417_p9 = pneg %p664_p8  ;;  %s23_s23 = ssub.s32 %s598_s12, %s678_s21 }
  0x11   : > { %s487_s24 = scalar_lea.vmem %s110_s19, 384  ;;  %p495_p5 = scmp.lt.s32.totalorder %s110_s19, %s110_s19 }
  0x12   : > { %p673_p11 = pnand %p417_p9, %p810_p1  ;;  %p488_p13 = scmp.ne.s32.totalorder %s110_s19, %s487_s24 }
  0x13   : > { %p496_p7 = scmp.lt.s32.totalorder %s487_s24, %s487_s24 }
  0x14   : > { %p478_p12 = pneg %p673_p11 }
  0x15   : > { %p497_p10 = por %p496_p7, %p495_p5 }
  0x16   : > { %p490_p0 = pnand %p488_p13, %p478_p12 }
  0x18   : > { %p491_p3 = pneg %p490_p0 }
  0x1a   : > { %p498_p2 = pnand %p497_p10, %p491_p3 }
  0x1c   : > { %501 = shalt.err (!%p498_p2)
}
  0x1d   : > { %s601_s25 = smov 64   ;;  %s602_s26 = smov 4  }
  0x1e   : > { %420 = dma.hbm_to_vmem [thread:$0]  (!%p673_p11), %s808_s1, 384, %s110_s19, [#allocation6], %s601_s25, %s601_s25, %s602_s26  }
  0x1f   : > { %p24_p2 = scmp.eq.s32.totalorder %s23_s23, 0  ;;  %p33_p9 = scmp.ne.s32.totalorder %s594_s11, %s590_s10 }
  0x20   : > { %p34_p10 = scmp.eq.s32.totalorder %s598_s12, 0  ;;  %p430_p12 = scmp.lt.s32.totalorder %s598_s12, 2 }
  0x21   : > { %s698_s29 = scalar_select %p24_p2, %s594_s11, %s26_s22  }
  0x22   : > { %p35_p13 = por %p34_p10, %p33_p9  ;;  %p818_p0 = scmp.eq.s32.totalorder %s645_s13, 1 }
  0x23   : > { %s123_s3 = sand.u32 1, %s594_s11   ;;  %s386_s4 = sshll.u32 %s598_s12, 7 }
  0x24   : > { %p702_p3 = por %p818_p0, %p33_p9  ;;  %s367_s5 = sshll.u32 %s123_s3, 3 }
  0x25   : > { %s711_s8 = scalar_lea.hbm %s807_s0, %s386_s4  ;;  %s127_s14 = scalar_lea.vmem [#allocation2], %s367_s5 }
  0x26   : > { %s819_s30 = scalar_select %p702_p3, 1, 0 }
  0x27   : > { %s134_s18 = sshll.u32 %s127_s14, 4  ;;  %p713_p11 = pnand %p430_p12, %p35_p13  ;;  %s717_s18 = int_to_ptr.vmem [resolvable:$true] %s134_s18 }
  0x28   : > { %s719_s20 = scalar_lea.sflag [#allocation3], %s123_s3  ;;  %s502_s22 = scalar_lea.hbm %s711_s8, 128 }
  0x29   : > { %p503_p5 = scmp.ne.s32.totalorder %s711_s8, %s502_s22  ;;  %p504_p7 = pneg %p713_p11 }
  0x2a   : > { %s507_s27 = scalar_lea.hbm %s807_s0, 256  ;;  %p508_p10 = scmp.lt.s32.totalorder %s711_s8, %s807_s0 }
  0x2b   : > { %p505_p2 = pnand %p504_p7, %p503_p5  ;;  %p509_p12 = scmp.lt.s32.totalorder %s507_s27, %s502_s22 }
  0x2d   : > { %p506_p9 = pneg %p505_p2  ;;  %p510_p13 = por %p509_p12, %p508_p10 }
  0x2f   : > { %p511_p0 = pnand %p510_p13, %p506_p9 }
  0x31   : > { %514 = shalt.err (!%p511_p0)
}
  0x32   : > { %s515_s3 = scalar_lea.vmem %s717_s18, 128  ;;  %s603_s5 = smov [#allocation2]  }
  0x33   : > { %p516_p1 = scmp.ne.s32.totalorder %s717_s18, %s515_s3  ;;  %s520_s6 = sshll.u32 %s603_s5, 4  ;;  %s521_s6 = int_to_ptr.vmem [resolvable:$false] %s520_s6 }
  0x34   : > { %s522_s7 = scalar_lea.vmem %s521_s6, 256  ;;  %p523_p2 = scmp.lt.s32.totalorder %s717_s18, %s521_s6 }
  0x35   : > { %p518_p6 = pnand %p516_p1, %p504_p7  ;;  %p524_p3 = scmp.lt.s32.totalorder %s522_s7, %s515_s3 }
  0x37   : > { %p519_p5 = pneg %p518_p6  ;;  %p525_p4 = por %p524_p3, %p523_p2 }
  0x39   : > { %p526_p8 = pnand %p525_p4, %p519_p5 }
  0x3b   : > { %529 = shalt.err (!%p526_p8)
}
  0x3c   : > { %424 = dma.hbm_to_vmem [thread:$0]  (!%p713_p11), %s711_s8, 128, %s717_s18, %s719_s20, %s601_s25, %s601_s25, %s602_s26  }
  0x3d   : > { %p821_p1 = scmp.ne.s32.totalorder %s816_s17, 0 }
  0x3e   : > { %s746_s14 = sand.u32 (!%p821_p1), 1, %s590_s10   ;;  %p822_p4 = scmp.ne.s32.totalorder (!%p821_p1), %s814_s15, 0 }
  0x3f   : > { %146 = sbr.rel (%p821_p1) target bundleno = 298 (0x12a), region = 28  ;;  %s371_s22 = sshll.u32 (!%p821_p1), %s746_s14, 3 }
  0x40   : > { %s149_s23 = scalar_lea.sflag (!%p821_p1), [#allocation3], %s746_s14  ;;  %s152_s24 = scalar_lea.vmem (!%p821_p1), [#allocation2], %s371_s22 }
  0x44   : > { %573 = dma.done.wait (%p822_p4), %s149_s23, 128  }
  0x45   : > { %575 = vsyncadd (%p822_p4), %s149_s23, 4294967168  ;;  %p823_p6 = scmp.eq.s32.totalorder %s645_s13, 0 }
  0x47   : > { %577 = dma.done.wait (%p823_p6), [#allocation6], 384   ;;  %p824_p8 = pmov %p823_p6 }
  0x48   : > { %v604_v0 = vmov 0.0   ;;  %vm605_vm0 = vmmov 0   ;;  %v472_v1 = vld [vmem:[#allocation5 + $0x10] sm:$0xff]   ;;  %v473_v2 = vld [vmem:[#allocation5 + $0x8] sm:$0xff]   ;;  %v474_v3 = vld [vmem:[#allocation5] sm:$0xff]   ;;  %vm211_vm1 = vcmask 392192  }
  0x49   : > { %579 = vsyncadd (%p824_p8), [#allocation6], 4294966912  ;;  %399 = vmatprep.subr.bf16.mxu0 %v604_v0  ;;  %405 = vmatprep.mubr.msk.bf16.mxu0 %vm605_vm0, %v604_v0  ;;  %v475_v4 = vld [vmem:[%s152_s24] sm:$0xff]   ;;  %s176_s15 = scalar_lea.vmem [#allocation7], %s371_s22  ;;  %s389_s25 = sshll.u32 %s645_s13, 7 }
  0x4a   : > { %400 = vmatpush3.bf16.msra.mxu0 %v472_v1  ;;  %s280_s17 = sshll.u32 %s176_s15, 4  ;;  %s764_s18 = scalar_lea.hbm %s809_s2, %s389_s25  ;;  %s759_s17 = int_to_ptr.vmem [resolvable:$true] %s280_s17 }
  0x4b   : > { %401 = vmatprep.subr.bf16.mxu0 %v604_v0  ;;  %s267_s19 = scalar_lea.sflag [#allocation4], %s746_s14  ;;  %s530_s20 = scalar_lea.vmem %s759_s17, 128 }
  0x4c   : > { %p531_p3 = scmp.ne.s32.totalorder %s759_s17, %s530_s20  ;;  %p825_p11 = scmp.ne.s32.totalorder %s819_s30, 0 }
  0x4d   : > { %s606_s13 = smov [#allocation7]  }
  0x4e   : > { %402 = vmatpush3.bf16.msra.mxu0 %v473_v2  ;;  %p532_p7 = pnand %p531_p3, %p825_p11  ;;  %s534_s27 = sshll.u32 %s606_s13, 4  ;;  %s535_s27 = int_to_ptr.vmem [resolvable:$false] %s534_s27 }
  0x4f   : > { %403 = vmatprep.subr.bf16.mxu0 %v604_v0  ;;  %s536_s28 = scalar_lea.vmem %s535_s27, 256  ;;  %p537_p10 = scmp.lt.s32.totalorder %s759_s17, %s535_s27 }
  0x50   : > { %p533_p9 = pneg %p532_p7  ;;  %p538_p12 = scmp.lt.s32.totalorder %s536_s28, %s530_s20 }
  0x52   : > { %404 = vmatpush3.bf16.msra.mxu0 %v474_v3  ;;  %p539_p13 = por %p538_p12, %p537_p10 }
  0x54   : > { %p540_p0 = pnand %p539_p13, %p533_p9 }
  0x55   : > { %406 = vmatmul.mubr.msk.bf16.vlgmr.msra.gmra.mxu0 %vm211_vm1, %v475_v4 }
 0x115   : > { %v249_v5 = vpop.f32.mrf.mxu0 }
 0x117   : > { %v407_v6 = vpop.f32.mrf.mxu0 }
 0x119   : > { %v252_v7 = vpop.f32.mrf.mxu0 }
 0x11a   : > { %v393_v8 = vpack.c.bf16 %v252_v7, %v249_v5 }
 0x11b   : > { %v408_v9 = vpop.f32.mrf.mxu0 }
 0x11c   : > { %394 = vst [vmem:[%s176_s15] sm:$0xff] %v393_v8  }
 0x11d   : > { %543 = shalt.err (!%p540_p0)
}
 0x11e   : > { %s544_s4 = scalar_lea.hbm %s764_s18, 128  ;;  %s548_s6 = scalar_lea.hbm %s809_s2, 256 }
 0x11f   : > { %p545_p5 = scmp.ne.s32.totalorder %s764_s18, %s544_s4  ;;  %p549_p4 = scmp.lt.s32.totalorder %s764_s18, %s809_s2 }
 0x120   : > { %p550_p6 = scmp.lt.s32.totalorder %s548_s6, %s544_s4 }
 0x121   : > { %p546_p2 = pnand %p545_p5, %p825_p11 }
 0x122   : > { %p551_p8 = por %p550_p6, %p549_p4 }
 0x123   : > { %p547_p1 = pneg %p546_p2 }
 0x125   : > { %p552_p3 = pnand %p551_p8, %p547_p1 }
 0x127   : > { %555 = shalt.err (!%p552_p3)
}
 0x128   : > { %s607_s23 = smov 64   ;;  %s608_s24 = smov 4  }
 0x129   : > { %415 = dma.vmem_to_hbm [thread:$0]  (%p825_p11), %s759_s17, 128, %s764_s18, %s267_s19, %s607_s23, %s607_s23, %s608_s24  }
 0x12a PF: > { %s295_s15 = sand.u32 1, %s586_s9   ;;  %p826_p7 = scmp.ne.s32.totalorder %s815_s16, 0 }
 0x12b   : > { %p827_p9 = scmp.ge.s32.totalorder %s598_s12, 2  ;;  %s296_s25 = scalar_lea.sflag [#allocation4], %s295_s15 }
 0x12d   : > { %p426_p10 = pnand %p827_p9, %p826_p7 }
 0x12f   : > { %p427_p12 = pneg %p426_p10 }
 0x131   : > { %581 = dma.done.wait (%p427_p12), %s296_s25, 128  }
 0x132   : > { %583 = vsyncadd (%p427_p12), %s296_s25, 4294967168  ;;  %p16_p13 = scmp.ge.s32.totalorder %s678_s21, 4   ;;  %s828_s9 = smov %s590_s10 }
 0x133   : > { %s829_s10 = smov %s594_s11  ;;  %s830_s11 = smov %s698_s29 }
 0x134   : > { %s831_s12 = smov %s678_s21  ;;  %18 = sbr.rel (!%p16_p13) target bundleno = 6 (0x6), region = 77 }
 0x139   :  { %301 = vsyncpa [#allocation3], 1 }
 0x13a   :  { %303 = vsyncpa [#allocation3 + $0x1], 1 }
 0x13b   :  { %304 = vsyncpa [#allocation6], 1 }
 0x13c   :  { %305 = vsyncpa [#allocation4], 1 }
 0x13d   :  { %307 = vsyncpa [#allocation4 + $0x1], 1 }

</bundles_post_ra>
